<compile_context>
chip_gen: v5e
topology: v5e:2x2
jax: 0.10.0
libtpu: 0.0.40
codegen_flags: <defaults>
</compile_context>

<pallas_src>
import jax
import jax.numpy as jnp
from jax import lax
from jax.experimental import pallas as pl
from jax.experimental.pallas import tpu as pltpu


def _linear_double_kernel(x_ref, w_ref, b_ref, out_ref, y_ref):
    # out = x @ W^T + b
    #   x: [B, in_f], w: [out_f, in_f] -> contract the last dims of both (MXU).
    acc = lax.dot_general(
        x_ref[...], w_ref[...],
        dimension_numbers=(((1,), (1,)), ((), ())),
        preferred_element_type=jnp.float32,
    )
    acc = acc + b_ref[...]                       # bias broadcast over batch (f32, VPU)
    out_ref[...] = acc.astype(out_ref.dtype)     # x = fc(x)
    y_ref[...] = (acc + acc).astype(y_ref.dtype)  # y = x + x (doubled in f32, one cast)


def module_c_forward(x, weight, bias):
    """x: [B, 10], weight: [10, 10] (PyTorch layout [out, in]), bias: [10]."""
    B, _ = x.shape
    out_f = weight.shape[0]
    b2d = bias.reshape(1, out_f)                 # zero-cost metadata reshape

    out_shapes = (
        jax.ShapeDtypeStruct((B, out_f), x.dtype),
        jax.ShapeDtypeStruct((B, out_f), x.dtype),
    )

    vmem = pl.BlockSpec(memory_space=pltpu.MemorySpace.VMEM)

    return pl.pallas_call(
        _linear_double_kernel,
        out_shape=out_shapes,
        in_specs=[vmem, vmem, vmem],
        out_specs=(vmem, vmem),
    )(x, weight, b2d)


if __name__ == "__main__":
    key = jax.random.PRNGKey(0)
    k_x, k_w, k_b = jax.random.split(key, 3)

    B, IN, OUT = 8, 10, 10

    # Deterministic parameter init (PyTorch Linear default: U(-1/sqrt(in), 1/sqrt(in)))
    bound = 1.0 / (IN ** 0.5)
    weight = jax.random.uniform(k_w, (OUT, IN), jnp.float32, -bound, bound)
    bias = jax.random.uniform(k_b, (OUT,), jnp.float32, -bound, bound)

    x = jax.random.normal(k_x, (B, IN), jnp.float32)

    out, y = module_c_forward(x, weight, bias)
    out, y = jax.block_until_ready((out, y))

    # Reference check in plain JAX
    ref_out = x @ weight.T + bias
    ref_y = ref_out + ref_out
    assert jnp.allclose(out, ref_out, atol=1e-5, rtol=1e-5)
    assert jnp.allclose(y, ref_y, atol=1e-5, rtol=1e-5)

    print("KERNEL_OK")
</pallas_src>

<mosaic_0001>
module attributes {stable_mosaic.version = 11 : i64} {
  func.func @_linear_double_kernel(%arg0: memref<8x10xf32, #tpu.memory_space<vmem>>, %arg1: memref<10x10xf32, #tpu.memory_space<vmem>>, %arg2: memref<1x10xf32, #tpu.memory_space<vmem>>, %arg3: memref<8x10xf32, #tpu.memory_space<vmem>>, %arg4: memref<8x10xf32, #tpu.memory_space<vmem>>) attributes {dimension_semantics = [], scalar_prefetch = 0 : i64, scratch_operands = 0 : i64, tpu.core_type = #tpu.core_type<tc>} {
    %c0 = arith.constant 0 : index
    %c0_0 = arith.constant 0 : index
    %0 = vector.load %arg0[%c0, %c0_0] : memref<8x10xf32, #tpu.memory_space<vmem>>, vector<8x10xf32>
    %c0_1 = arith.constant 0 : index
    %c0_2 = arith.constant 0 : index
    %1 = vector.load %arg1[%c0_1, %c0_2] : memref<10x10xf32, #tpu.memory_space<vmem>>, vector<10x10xf32>
    %cst = arith.constant dense<0.000000e+00> : vector<8x10xf32>
    %2 = tpu.matmul %0, %1, %cst {dimension_numbers = #tpu.dot_dimension_numbers<[1], [1], [0], [0], [0, 0, 1, 0], [], []>} : vector<8x10xf32>, vector<10x10xf32>, vector<8x10xf32> -> vector<8x10xf32>
    %c0_3 = arith.constant 0 : index
    %c0_4 = arith.constant 0 : index
    %3 = vector.load %arg2[%c0_3, %c0_4] : memref<1x10xf32, #tpu.memory_space<vmem>>, vector<1x10xf32>
    %4 = vector.broadcast %3 : vector<1x10xf32> to vector<8x10xf32>
    %5 = arith.addf %2, %4 : vector<8x10xf32>
    %c0_5 = arith.constant 0 : index
    %c0_6 = arith.constant 0 : index
    %6 = vector.load %arg3[%c0_5, %c0_6] : memref<8x10xf32, #tpu.memory_space<vmem>>, vector<8x10xf32>
    tpu.vector_store %arg3[%c0_5, %c0_6], %5 {strides = array<i32>} : memref<8x10xf32, #tpu.memory_space<vmem>>, vector<8x10xf32>,
    %7 = arith.addf %5, %5 : vector<8x10xf32>
    %c0_7 = arith.constant 0 : index
    %c0_8 = arith.constant 0 : index
    %8 = vector.load %arg4[%c0_7, %c0_8] : memref<8x10xf32, #tpu.memory_space<vmem>>, vector<8x10xf32>
    tpu.vector_store %arg4[%c0_7, %c0_8], %7 {strides = array<i32>} : memref<8x10xf32, #tpu.memory_space<vmem>>, vector<8x10xf32>,
    return
  }
}

</mosaic_0001>

<bundles_post_ra>
// kernel: tpu_custom_call.1
= control target key start
LH: loop header
LB: loop body
LE: loop exit
PB: predicated region body
PF: predicated region fallthrough
CT: control target
= control target key end

     0   :  { %10 = vsyncpa [#allocation3], 0  ;;  %s287_s0 = inlined_call_operand.hbm [shape: f32[8,10], index: 0, kind: input, shape index: {}]   ;;  %s288_s1 = inlined_call_operand.hbm [shape: f32[10,10], index: 1, kind: input, shape index: {}]   ;;  %s289_s2 = inlined_call_operand.vmem [shape: f32[1,10], index: 2, kind: input, shape index: {}]   ;;  %s290_s3 = inlined_call_operand.hbm [shape: f32[8,10], index: 3, kind: output, shape index: {0}]   ;;  %s291_s4 = inlined_call_operand.hbm [shape: f32[8,10], index: 4, kind: output, shape index: {1}]  }
   0x1   :  { %11 = vsyncpa [#allocation6], 0 }
   0x2   :  { %12 = vsyncpa [#allocation4], 0 }
   0x3   :  { %13 = vsyncpa [#allocation9], 0  ;;  %s19_s17 = sshll.u32 %s287_s0, 4  ;;  %s236_s18 = smov [#allocation2]   ;;  %s20_s17 = int_to_ptr.hbm [resolvable:$true] %s19_s17 }
   0x4   :  { %s21_s19 = sshll.u32 %s236_s18, 4  ;;  %s29_s22 = sshll.u32 %s288_s1, 4  ;;  %s22_s19 = int_to_ptr.vmem [resolvable:$true] %s21_s19  ;;  %s30_s22 = int_to_ptr.hbm [resolvable:$true] %s29_s22 }
   0x5   :  { %24 = dma.hbm_to_vmem [thread:$0]  %s20_s17, 128, %s22_s19, [#allocation3]  }
   0x6   :  { %s237_s23 = smov [#allocation5]   ;;  %s238_s25 = smov 128  }
   0x7   :  { %s31_s24 = sshll.u32 %s237_s23, 4  ;;  %s239_s26 = smov 8   ;;  %s32_s24 = int_to_ptr.vmem [resolvable:$true] %s31_s24 }
   0x8   :  { %37 = dma.hbm_to_vmem [thread:$0]  %s30_s22, 256, %s32_s24, [#allocation6], %s238_s25, %s238_s25, %s239_s26  }
   0x9   :  { %228 = dma.done.wait [#allocation3], 128  }
   0xa   :  { %229 = vsyncadd [#allocation3], 4294967168 }
   0xb   :  { %230 = dma.done.wait [#allocation6], 256  }
   0xc   :  { %231 = vsyncadd [#allocation6], 4294967040  ;;  %vm55_vm0 = vcmask 80896   ;;  %v50_v0 = vld [vmem:[#allocation5 + $0x8] sm:$0x3]  ;;  %v49_v1 = vld [vmem:[#allocation5] sm:$0xff] }
   0xd   :  { %122 = vmatpush.xpose.msk.msra.mxu0 %vm55_vm0, %v50_v0  ;;  %v48_v2 = vld [vmem:[#allocation2] sm:$0xff]  ;;  %s240_s27 = smov [#allocation7]   ;;  %s95_s5 = sshll.u32 %s290_s3, 4  ;;  %s96_s5 = int_to_ptr.hbm [resolvable:$true] %s95_s5 }
   0xe   :  { %v131_v3 = vld [vmem:[%s289_s2] ss:$0 sm:$0xff]  ;;  %s93_s28 = sshll.u32 %s240_s27, 4  ;;  %s241_s6 = smov [#allocation8]   ;;  %s94_s28 = int_to_ptr.vmem [resolvable:$true] %s93_s28 }
   0xf   :  { %s104_s7 = sshll.u32 %s241_s6, 4  ;;  %s106_s10 = sshll.u32 %s291_s4, 4  ;;  %s105_s7 = int_to_ptr.vmem [resolvable:$true] %s104_s7  ;;  %s107_s10 = int_to_ptr.hbm [resolvable:$true] %s106_s10 }
  0x11   :  { %123 = vmatpush.xpose.msk.msra.mxu0 %vm55_vm0, %v49_v1 }
  0x14   :  { %124 = vmatmul.msk.f32.vlgmr.msra.gmra.mxu0 %vm55_vm0, %v48_v2 }
  0x91   :  { %v82_v4 = vpop.f32.mrf.mxu0 }
  0x92   :  { %v83_v5 = vadd.f32 %v131_v3, %v82_v4 }
  0x94   :  { %v86_v6 = vadd.f32 %v83_v5, %v83_v5  ;;  %85 = vst.msk [vmem:[#allocation7] sm:$0xff] %vm55_vm0, %v83_v5 }
  0x95   :  { %98 = dma.vmem_to_hbm [thread:$0]  %s94_s28, 128, %s96_s5, [#allocation4]  }
  0x96   :  { %87 = vst.msk [vmem:[#allocation8] sm:$0xff] %vm55_vm0, %v86_v6 }
  0x97   :  { %109 = dma.vmem_to_hbm [thread:$0]  %s105_s7, 128, %s107_s10, [#allocation9]  }
  0x98   :  { %232 = dma.done.wait [#allocation4], 128  }
  0x99   :  { %233 = vsyncadd [#allocation4], 4294967168 }
  0x9a   :  { %234 = dma.done.wait [#allocation9], 128  }
  0x9b   :  { %235 = vsyncadd [#allocation9], 4294967168 }
  0x9c   :  { %118 = vsyncpa [#allocation3], 1 }
  0x9d   :  { %119 = vsyncpa [#allocation6], 1 }
  0x9e   :  { %120 = vsyncpa [#allocation4], 1 }
  0x9f   :  { %121 = vsyncpa [#allocation9], 1 }

</bundles_post_ra>
